<compile_context>
chip_gen: v5e
topology: v5e:2x2
jax: 0.10.0
libtpu: 0.0.40
codegen_flags: <defaults>
</compile_context>

<pallas_src>
import jax
import jax.numpy as jnp
from jax.experimental import pallas as pl
from jax.experimental.pallas import tpu as pltpu


def _round_up(x, m):
    return ((x + m - 1) // m) * m


# ----------------------------- Pallas kernel ------------------------------- #
def _patch_proj_kernel(x_ref, w_ref, b_ref, o_ref):
    # x_ref: (TM, K) tile of flattened patches
    # w_ref: (K, Np) projection weight (resident across grid steps)
    # b_ref: (1, Np) bias               (resident across grid steps)
    # o_ref: (TM, Np) projected tile (lane-dense Np, multiple of 128)
    acc = jnp.dot(x_ref[...], w_ref[...], preferred_element_type=jnp.float32)
    o_ref[...] = (acc + b_ref[...]).astype(o_ref.dtype)


def _patch_proj(x_flat, w_flat, bias_row, out_dtype, tm):
    """x_flat: (M, K), w_flat: (K, Np), bias_row: (1, Np). M % tm == 0, Np % 128 == 0."""
    M, K = x_flat.shape
    _, Np = w_flat.shape
    grid_m = M // tm

    flops = 2 * M * K * Np
    bytes_accessed = (
        M * K * x_flat.dtype.itemsize
        + K * Np * w_flat.dtype.itemsize
        + Np * bias_row.dtype.itemsize
        + M * Np * jnp.dtype(out_dtype).itemsize
    )

    return pl.pallas_call(
        _patch_proj_kernel,
        out_shape=jax.ShapeDtypeStruct((M, Np), out_dtype),
        grid_spec=pltpu.PrefetchScalarGridSpec(
            num_scalar_prefetch=0,
            grid=(grid_m,),
            in_specs=[
                pl.BlockSpec((tm, K), lambda i: (i, 0)),   # pipelined activation tile
                pl.BlockSpec((K, Np), lambda i: (0, 0)),   # weight: stays resident
                pl.BlockSpec((1, Np), lambda i: (0, 0)),   # bias:   stays resident
            ],
            out_specs=pl.BlockSpec((tm, Np), lambda i: (i, 0)),
        ),
        compiler_params=pltpu.CompilerParams(
            dimension_semantics=("parallel",),             # megacore on v7x
        ),
        cost_estimate=pl.CostEstimate(
            flops=flops, transcendentals=0, bytes_accessed=bytes_accessed),
    )(x_flat, w_flat, bias_row)


# ------------------------------ Module wrapper ------------------------------ #
class PatchEmbed:
    """Image to Patch Embedding (Pallas/TPU). norm_layer=None path only."""

    def __init__(self, patch_size=4, in_chans=3, embed_dim=96, key=None,
                 compute_dtype=jnp.bfloat16, tile_m=512):
        self.patch_size = (patch_size, patch_size)
        self.in_chans = in_chans
        self.embed_dim = embed_dim
        self.compute_dtype = compute_dtype
        self.tile_m = tile_m
        if key is None:
            key = jax.random.PRNGKey(0)
        kw, kb = jax.random.split(key)
        # Conv2d weight: (out_chans, in_chans, kh, kw); deterministic init.
        fan_in = in_chans * patch_size * patch_size
        bound = 1.0 / (fan_in ** 0.5)
        self.weight = jax.random.uniform(
            kw, (embed_dim, in_chans, patch_size, patch_size),
            minval=-bound, maxval=bound, dtype=jnp.float32)
        self.bias = jax.random.uniform(
            kb, (embed_dim,), minval=-bound, maxval=bound, dtype=jnp.float32)
        # TODO(synk): norm_layer (LayerNorm over embed_dim) not implemented; default is None.

    def __call__(self, x):
        # x: (B, C, H, W)  -- NCHW, matching PyTorch.
        B, C, H, W = x.shape
        ph, pw = self.patch_size
        pad_w = (-W) % pw
        pad_h = (-H) % ph
        if pad_w or pad_h:
            # F.pad(x, (0, pad_w)) pads last dim; (0,0,0,pad_h) pads H dim.
            x = jnp.pad(x, ((0, 0), (0, 0), (0, pad_h), (0, pad_w)))
        Hp, Wp = H + pad_h, W + pad_w
        Wh, Ww = Hp // ph, Wp // pw

        # Extract non-overlapping patches; contraction order (c, kh, kw) matches Conv2d.
        # TODO(synk): fuse this patch-extraction rearrange into the Pallas kernel (or take
        # NHWC input) to avoid the extra HBM pass over the activations done here by XLA.
        xp = x.reshape(B, C, Wh, ph, Ww, pw)
        xp = jnp.transpose(xp, (0, 2, 4, 1, 3, 5))            # (B, Wh, Ww, C, ph, pw)
        x_flat = xp.reshape(B * Wh * Ww, C * ph * pw)         # (M, K)
        x_flat = x_flat.astype(self.compute_dtype)

        M, K = x_flat.shape
        N = self.embed_dim

        # Lane-dense output: pad N up to a multiple of 128 (avoids masked vst).
        Np = _round_up(N, 128)
        # M tiling: tile must be a multiple of 8 (sublane); pad M up to a tile multiple.
        tm = min(self.tile_m, _round_up(M, 8))
        Mp = _round_up(M, tm)
        if Mp != M:
            x_flat = jnp.pad(x_flat, ((0, Mp - M), (0, 0)))

        w_flat = self.weight.reshape(N, K).T                  # (K, N), order (c, kh, kw)
        bias = self.bias
        if Np != N:
            w_flat = jnp.pad(w_flat, ((0, 0), (0, Np - N)))
            bias = jnp.pad(bias, (0, Np - N))
        w_flat = w_flat.astype(self.compute_dtype)
        b_row = bias.reshape(1, Np).astype(jnp.float32)

        out = _patch_proj(x_flat, w_flat, b_row, x.dtype, tm)  # (Mp, Np)
        out = out[:M, :N]

        # NOTE: Swin consumers immediately do flatten(2).transpose(1,2); returning the
        # (B, Wh*Ww, N) form directly would save two HBM transposes, but we keep the
        # module's NCHW output contract.
        out = out.reshape(B, Wh, Ww, N)
        out = jnp.transpose(out, (0, 3, 1, 2))                # (B, embed_dim, Wh, Ww)
        return out


# ------------------------------ Reference check ----------------------------- #
def _reference(x, weight, bias, patch):
    # Pure-JAX conv reference (stride == kernel), f32.
    out = jax.lax.conv_general_dilated(
        x, weight, window_strides=(patch, patch), padding="VALID",
        dimension_numbers=("NCHW", "OIHW", "NCHW"))
    return out + bias.reshape(1, -1, 1, 1)


if __name__ == "__main__":
    key = jax.random.PRNGKey(0)
    k_x, k_mod = jax.random.split(key)

    B, C, H, W = 2, 4, 16, 16
    patch_size, embed_dim = 4, 32

    x = jax.random.normal(k_x, (B, C, H, W), dtype=jnp.float32)

    # 1) Exact-path check (f32 compute, small tile -> multi-step pipelined grid).
    pe_f32 = PatchEmbed(patch_size=patch_size, in_chans=C, embed_dim=embed_dim,
                        key=k_mod, compute_dtype=jnp.float32, tile_m=8)
    out_f32 = jax.block_until_ready(pe_f32(x))
    ref = _reference(x, pe_f32.weight, pe_f32.bias, patch_size)
    assert out_f32.shape == (B, embed_dim, H // patch_size, W // patch_size), out_f32.shape
    assert jnp.allclose(out_f32, ref, atol=1e-4, rtol=1e-4), \
        float(jnp.max(jnp.abs(out_f32 - ref)))

    # 2) Fast path (bf16 inputs, f32 accumulation) -- looser tolerance vs f32 conv.
    pe_bf16 = PatchEmbed(patch_size=patch_size, in_chans=C, embed_dim=embed_dim,
                         key=k_mod, compute_dtype=jnp.bfloat16)
    out_bf16 = jax.block_until_ready(pe_bf16(x))
    assert out_bf16.shape == (B, embed_dim, H // patch_size, W // patch_size), out_bf16.shape
    assert jnp.allclose(out_bf16, ref, atol=5e-2, rtol=5e-2), \
        float(jnp.max(jnp.abs(out_bf16 - ref)))

    print("KERNEL_OK")
</pallas_src>

<mosaic_0001>
module attributes {stable_mosaic.version = 11 : i64} {
  func.func @_patch_proj_kernel(%arg0: i32, %arg1: memref<8x64xf32, #tpu.memory_space<vmem>>, %arg2: memref<64x128xf32, #tpu.memory_space<vmem>>, %arg3: memref<1x128xf32, #tpu.memory_space<vmem>>, %arg4: memref<8x128xf32, #tpu.memory_space<vmem>>) attributes {dimension_semantics = [#tpu.dimension_semantics<parallel>], iteration_bounds = array<i64: 4>, scalar_prefetch = 0 : i64, scratch_operands = 0 : i64, tpu.core_type = #tpu.core_type<tc>, window_params = [{transform_indices = @transform_0, window_bounds = array<i64: 8, 64>}, {pipeline_mode = #tpu.pipeline_mode<synchronous>, transform_indices = @transform_1, window_bounds = array<i64: 64, 128>}, {pipeline_mode = #tpu.pipeline_mode<synchronous>, transform_indices = @transform_2, window_bounds = array<i64: 1, 128>}, {transform_indices = @transform_3, window_bounds = array<i64: 8, 128>}]} {
    %c0 = arith.constant 0 : index
    %c0_0 = arith.constant 0 : index
    %0 = vector.load %arg1[%c0, %c0_0] : memref<8x64xf32, #tpu.memory_space<vmem>>, vector<8x64xf32>
    %c0_1 = arith.constant 0 : index
    %c0_2 = arith.constant 0 : index
    %1 = vector.load %arg2[%c0_1, %c0_2] : memref<64x128xf32, #tpu.memory_space<vmem>>, vector<64x128xf32>
    %cst = arith.constant dense<0.000000e+00> : vector<8x128xf32>
    %2 = tpu.matmul %0, %1, %cst {dimension_numbers = #tpu.dot_dimension_numbers<[1], [0], [0], [1], [0, 0, 1, 1], [], []>} : vector<8x64xf32>, vector<64x128xf32>, vector<8x128xf32> -> vector<8x128xf32>
    %c0_3 = arith.constant 0 : index
    %c0_4 = arith.constant 0 : index
    %3 = vector.load %arg3[%c0_3, %c0_4] : memref<1x128xf32, #tpu.memory_space<vmem>>, vector<1x128xf32>
    %4 = vector.broadcast %3 : vector<1x128xf32> to vector<8x128xf32>
    %5 = arith.addf %2, %4 : vector<8x128xf32>
    %c0_5 = arith.constant 0 : index
    %c0_6 = arith.constant 0 : index
    %6 = vector.load %arg4[%c0_5, %c0_6] : memref<8x128xf32, #tpu.memory_space<vmem>>, vector<8x128xf32>
    tpu.vector_store %arg4[%c0_5, %c0_6], %5 {strides = array<i32>} : memref<8x128xf32, #tpu.memory_space<vmem>>, vector<8x128xf32>,
    return
  }
  func.func @transform_0(%arg0: i32) -> (i32, i32) {
    %c0_i32 = arith.constant 0 : i32
    %c0_i32_0 = arith.constant 0 : i32
    return %arg0, %c0_i32 : i32, i32
  }
  func.func @transform_1(%arg0: i32) -> (i32, i32) {
    %c0_i32 = arith.constant 0 : i32
    %c0_i32_0 = arith.constant 0 : i32
    %c0_i32_1 = arith.constant 0 : i32
    return %c0_i32, %c0_i32_0 : i32, i32
  }
  func.func @transform_2(%arg0: i32) -> (i32, i32) {
    %c0_i32 = arith.constant 0 : i32
    %c0_i32_0 = arith.constant 0 : i32
    %c0_i32_1 = arith.constant 0 : i32
    return %c0_i32, %c0_i32_0 : i32, i32
  }
  func.func @transform_3(%arg0: i32) -> (i32, i32) {
    %c0_i32 = arith.constant 0 : i32
    %c0_i32_0 = arith.constant 0 : i32
    return %arg0, %c0_i32 : i32, i32
  }
}

</mosaic_0001>

<bundles_post_ra>
// kernel: tpu_custom_call.1
= control target key start
LH: loop header
LB: loop body
LE: loop exit
PB: predicated region body
PF: predicated region fallthrough
CT: control target
= control target key end

     0   :  { %8 = vsyncpa [#allocation3], 0  ;;  %s706_s0 = inlined_call_operand.hbm [shape: f32[32,64], index: 0, kind: input, shape index: {}]   ;;  %s707_s1 = inlined_call_operand.hbm [shape: f32[64,128], index: 1, kind: input, shape index: {}]   ;;  %s708_s2 = inlined_call_operand.vmem [shape: f32[1,128], index: 2, kind: input, shape index: {}]   ;;  %s709_s3 = inlined_call_operand.hbm [shape: f32[32,128], index: 3, kind: output, shape index: {}]  }
   0x1   :  { %10 = vsyncpa [#allocation3 + $0x1], 0 }
   0x2   :  { %11 = vsyncpa [#allocation6], 0 }
   0x3   :  { %12 = vsyncpa [#allocation4], 0 }
   0x4   :  { %14 = vsyncpa [#allocation4 + $0x1], 0  ;;  %s569_s12 = smov 0   ;;  %s571_s13 = smov 0  }
   0x5   :  { %s573_s14 = smov 0   ;;  %s575_s15 = smov 0  }
   0x6 LB: > { %s130_s18 = sshll.u32 %s707_s1, 4  ;;  %s593_s19 = sadd.s32 4294967295, %s544_s15   ;;  %s544_s15 = sphi %s575_s15, %s718_s15   ;;  %s540_s14 = sphi %s573_s14, %s717_s14   ;;  %s536_s13 = sphi %s571_s13, %s716_s13   ;;  %s532_s12 = sphi %s569_s12, %s715_s12   ;;  %s131_s18 = int_to_ptr.hbm [resolvable:$true] %s130_s18 }
   0x7   : > { %p340_p0 = scmp.ge.s32.totalorder %s544_s15, 1  ;;  %p41_p1 = scmp.eq.s32.totalorder %s593_s19, 0 }
   0x8   : > { %p119_p2 = scmp.lt.s32.totalorder %s544_s15, 5  ;;  %s546_s21 = smov [#allocation5]  }
   0x9   : > { %s132_s22 = sshll.u32 %s546_s21, 4  ;;  %s547_s23 = smov 128   ;;  %s133_s22 = int_to_ptr.vmem [resolvable:$true] %s132_s22 }
   0xa   : > { %p598_p3 = pnand %p340_p0, %p119_p2  ;;  %s548_s24 = smov 8  }
   0xb   : > { %s339_s25 = sadd.s32 4294967294, %s544_s15   ;;  %s608_s26 = sadd.s32 1, %s544_s15  }
   0xc   : > { %p362_p4 = pneg %p598_p3  ;;  %s27_s27 = sadd.s32 1, %s540_s14 }
   0xd   : > { %s24_s28 = ssub.s32 %s544_s15, %s608_s26  ;;  %p34_p6 = scmp.ne.s32.totalorder %s540_s14, %s536_s13 }
   0xe   : > { %p363_p5 = pnand %p362_p4, %p41_p1  ;;  %p25_p7 = scmp.eq.s32.totalorder %s24_s28, 0 }
   0xf   : > { %p35_p8 = scmp.eq.s32.totalorder %s544_s15, 0  ;;  %p40_p9 = scmp.ne.s32.totalorder %s536_s13, %s532_s12 }
  0x10   : > { %365 = dma.hbm_to_vmem [thread:$0]  (!%p363_p5), %s131_s18, 1024, %s133_s22, [#allocation6], %s547_s23, %s547_s23, %s548_s24  }
  0x11   : > { %p106_p10 = scmp.eq.s32.totalorder %s593_s19, 3  ;;  %p624_p11 = por %p41_p1, %p40_p9 }
  0x12   : > { %s620_s29 = scalar_select %p25_p7, %s540_s14, %s27_s27  }
  0x13   : > { %p628_p12 = por %p106_p10, %p34_p6  ;;  %p112_p13 = scmp.eq.s32.totalorder %s339_s25, 3 }
  0x14   : > { %p36_p0 = por %p35_p8, %p34_p6  ;;  %s149_s5 = sand.u32 1, %s540_s14  }
  0x15   : > { %p633_p2 = por %p112_p13, %p40_p9  ;;  %p375_p4 = scmp.lt.s32.totalorder %s544_s15, 4 }
  0x16   : > { %s343_s7 = sshll.u32 %s149_s5, 3  ;;  %s344_s8 = sshll.u32 %s544_s15, 3 }
  0x17   : > { %s157_s11 = scalar_lea.hbm %s706_s0, %s344_s8  ;;  %s153_s17 = scalar_lea.vmem [#allocation2], %s343_s7 }
  0x18   : > { %s159_s16 = sshll.u32 %s157_s11, 4  ;;  %s161_s18 = sshll.u32 %s153_s17, 4  ;;  %s160_s16 = int_to_ptr.hbm [resolvable:$true] %s159_s16  ;;  %s162_s18 = int_to_ptr.vmem [resolvable:$true] %s161_s18 }
  0x19   : > { %p642_p5 = pnand %p375_p4, %p36_p0  ;;  %s150_s22 = scalar_lea.sflag [#allocation3], %s149_s5 }
  0x1a   : > { %s444_s23 = sshra.s32 %s160_s16, 4  ;;  %s451_s28 = scalar_lea.hbm %s706_s0, 32  ;;  %s445_s23 = int_to_ptr.hbm [resolvable:$true] %s444_s23 }
  0x1b   : > { %s446_s24 = scalar_lea.hbm %s445_s23, 8  ;;  %p448_p7 = pneg %p642_p5 }
  0x1c   : > { %p447_p6 = scmp.ne.s32.totalorder %s445_s23, %s446_s24  ;;  %p452_p10 = scmp.lt.s32.totalorder %s445_s23, %s706_s0 }
  0x1d   : > { %p453_p13 = scmp.lt.s32.totalorder %s451_s28, %s446_s24 }
  0x1e   : > { %p449_p8 = pnand %p448_p7, %p447_p6 }
  0x1f   : > { %p454_p0 = por %p453_p13, %p452_p10 }
  0x20   : > { %p450_p9 = pneg %p449_p8 }
  0x22   : > { %p455_p4 = pnand %p454_p0, %p450_p9 }
  0x24   : > { %458 = shalt.err (!%p455_p4)
}
  0x25   : > { %369 = dma.hbm_to_vmem [thread:$0]  (!%p642_p5), %s160_s16, 128, %s162_s18, %s150_s22  }
  0x26   : > { %170 = sbr.rel (%p598_p3) target bundleno = 193 (0xc1), region = 32  ;;  %s659_s5 = sand.u32 (!%p598_p3), 1, %s536_s13  }
  0x27   : > { %s346_s9 = sshll.u32 (!%p598_p3), %s659_s5, 3  ;;  %s173_s10 = scalar_lea.sflag (!%p598_p3), [#allocation3], %s659_s5 }
  0x28   : > { %s176_s11 = scalar_lea.vmem (!%p598_p3), [#allocation2], %s346_s9 }
  0x2b   : > { %519 = dma.done.wait (%p624_p11), %s173_s10, 128  }
  0x2c   : > { %521 = vsyncadd (%p624_p11), %s173_s10, 4294967168 }
  0x2d   : > { %523 = dma.done.wait (%p41_p1), [#allocation6], 1024  }
  0x2e   : > { %525 = vsyncadd (%p41_p1), [#allocation6], 4294966272  ;;  %v213_v0 = vld [vmem:[#allocation5 + $0x38] sm:$0xff]  ;;  %v212_v1 = vld [vmem:[#allocation5 + $0x30] sm:$0xff]  ;;  %vm218_vm0 = vcmask 523264   ;;  %s351_s20 = sshll.u32 %s593_s19, 3 }
  0x2f   : > { %230 = vmatpush.msra.mxu0 %v213_v0  ;;  %v211_v2 = vld [vmem:[#allocation5 + $0x28] sm:$0xff]  ;;  %v210_v3 = vld [vmem:[#allocation5 + $0x20] sm:$0xff]  ;;  %v209_v4 = vld [vmem:[#allocation5 + $0x18] sm:$0xff]  ;;  %s254_s17 = scalar_lea.hbm %s709_s3, %s351_s20  ;;  %s204_s22 = scalar_lea.vmem [#allocation7], %s346_s9 }
  0x30   : > { %v208_v5 = vld [vmem:[#allocation5 + $0x10] sm:$0xff]  ;;  %v207_v6 = vld [vmem:[#allocation5 + $0x8] sm:$0xff]  ;;  %v206_v7 = vld [vmem:[#allocation5] sm:$0xff]  ;;  %s256_s23 = sshll.u32 %s204_s22, 4  ;;  %s258_s24 = sshll.u32 %s254_s17, 4  ;;  %s257_s23 = int_to_ptr.vmem [resolvable:$true] %s256_s23  ;;  %s259_s24 = int_to_ptr.hbm [resolvable:$true] %s258_s24 }
  0x31   : > { %231 = vmatpush.msra.mxu0 %v212_v1  ;;  %v205_v8 = vld [vmem:[%s176_s11] sm:$0xff]  ;;  %s244_s25 = scalar_lea.sflag [#allocation4], %s659_s5  ;;  %s488_s27 = sshra.s32 %s259_s24, 4  ;;  %s489_s27 = int_to_ptr.hbm [resolvable:$true] %s488_s27 }
  0x32   : > { %v413_v9 = vld [vmem:[%s708_s2] ss:$0 sm:$0xff]  ;;  %s490_s19 = scalar_lea.hbm %s489_s27, 8  ;;  %s494_s8 = scalar_lea.hbm %s709_s3, 32 }
  0x33   : > { %232 = vmatpush.msra.mxu0 %v211_v2  ;;  %p491_p1 = scmp.ne.s32.totalorder %s489_s27, %s490_s19  ;;  %p495_p5 = scmp.lt.s32.totalorder %s489_s27, %s709_s3 }
  0x34   : > { %p496_p6 = scmp.lt.s32.totalorder %s494_s8, %s490_s19 }
  0x35   : > { %233 = vmatpush.msra.mxu0 %v210_v3  ;;  %p492_p3 = pnand %p491_p1, %p628_p12 }
  0x36   : > { %p497_p7 = por %p496_p6, %p495_p5 }
  0x37   : > { %234 = vmatpush.msra.mxu0 %v209_v4  ;;  %p493_p11 = pneg %p492_p3 }
  0x39   : > { %235 = vmatpush.msra.mxu0 %v208_v5  ;;  %p498_p8 = pnand %p497_p7, %p493_p11 }
  0x3b   : > { %236 = vmatpush.msra.mxu0 %v207_v6 }
  0x3d   : > { %237 = vmatpush.msra.mxu0 %v206_v7 }
  0x3e   : > { %349 = vmatmul.msk.f32.vlgmr.msra.gmra.mxu0 %vm218_vm0, %v205_v8 }
  0xbb   : > { %v239_v10 = vpop.f32.mrf.mxu0 }
  0xbc   : > { %v240_v11 = vadd.f32 %v413_v9, %v239_v10 }
  0xbe   : > { %242 = vst [vmem:[%s204_s22] sm:$0xff] %v240_v11 }
  0xbf   : > { %501 = shalt.err (!%p498_p8)
}
  0xc0   : > { %360 = dma.vmem_to_hbm [thread:$0]  (%p628_p12), %s257_s23, 128, %s259_s24, %s244_s25  }
  0xc1 PF: > { %p377_p9 = scmp.ge.s32.totalorder %s544_s15, 2  ;;  %s270_s5 = sand.u32 1, %s532_s12  }
  0xc2   : > { %s271_s11 = scalar_lea.sflag [#allocation4], %s270_s5 }
  0xc3   : > { %p371_p10 = pnand %p377_p9, %p633_p2 }
  0xc5   : > { %p372_p13 = pneg %p371_p10 }
  0xc7   : > { %527 = dma.done.wait (%p372_p13), %s271_s11, 128  }
  0xc8   : > { %529 = vsyncadd (%p372_p13), %s271_s11, 4294967168  ;;  %p17_p0 = scmp.ge.s32.totalorder %s608_s26, 6   ;;  %s715_s12 = smov %s536_s13 }
  0xc9   : > { %s716_s13 = smov %s540_s14  ;;  %s717_s14 = smov %s620_s29 }
  0xca   : > { %s718_s15 = smov %s608_s26  ;;  %19 = sbr.rel (!%p17_p0) target bundleno = 6 (0x6), region = 81 }
  0xcf   :  { %277 = vsyncpa [#allocation3], 1 }
  0xd0   :  { %279 = vsyncpa [#allocation3 + $0x1], 1 }
  0xd1   :  { %280 = vsyncpa [#allocation6], 1 }
  0xd2   :  { %281 = vsyncpa [#allocation4], 1 }
  0xd3   :  { %283 = vsyncpa [#allocation4 + $0x1], 1 }

</bundles_post_ra>
